<compile_context>
chip_gen: v7x
topology: tpu7x:2x2x1
jax: 0.10.0
libtpu: 0.0.40
codegen_flags: <defaults>
</compile_context>

<pallas_src>
import jax
import jax.numpy as jnp
from jax.experimental import pallas as pl
from jax.experimental.pallas import tpu as pltpu


def _round_up(a, m):
    return ((a + m - 1) // m) * m


def _cdiv(a, b):
    return (a + b - 1) // b


def _affine_relu_block_kernel(x_ref, w_ref, b_ref, o_ref):
    # x: (tr, tl); w, b: (tr, 1) per-row-block params (sublane broadcast).
    y = x_ref[...].astype(jnp.float32) * w_ref[...] + b_ref[...]
    o_ref[...] = jnp.maximum(y, 0.0).astype(o_ref.dtype)


def _make_resident_kernel(tr):
    # w, b stay resident in VMEM for the whole grid; slice this block's rows.
    def kernel(x_ref, w_ref, b_ref, o_ref):
        r0 = pl.multiple_of(pl.program_id(0) * tr, 8)
        w = w_ref[pl.ds(r0, tr), :]
        b = b_ref[pl.ds(r0, tr), :]
        y = x_ref[...].astype(jnp.float32) * w + b
        o_ref[...] = jnp.maximum(y, 0.0).astype(o_ref.dtype)
    return kernel


def learnable_activation_relu(x, weight, bias):
    """relu(x * weight + bias); x: (N, C, H, W), weight/bias: (1, C, 1, 1)."""
    N, C, H, W = x.shape
    itemsize = jnp.dtype(x.dtype).itemsize
    pack = max(8, 32 // itemsize)  # sublane packing: 8 (f32), 16 (bf16), 32 (int8/fp8)

    # ---- pick a lane-dense 2-D factoring of the elementwise slab -----------
    if (H * W) % 128 == 0:
        R, L, row_rep = N * C, H * W, 1
    elif W % 128 == 0:
        R, L, row_rep = N * C * H, W, H      # alternate factoring keeps lanes dense
    else:
        R, L, row_rep = N * C, H * W, 1      # lane-sparse; handled below

    x2 = x.reshape(R, L)
    w_rows = jnp.broadcast_to(
        weight.reshape(1, C, 1).astype(jnp.float32), (N, C, row_rep)).reshape(R, 1)
    b_rows = jnp.broadcast_to(
        bias.reshape(1, C, 1).astype(jnp.float32), (N, C, row_rep)).reshape(R, 1)

    # ---- generation-aware VMEM limit / per-tile budget ----------------------
    try:
        vmem_cap = int(pltpu.get_tpu_info().vmem_capacity_bytes)
    except Exception:
        vmem_cap = 64 * 1024 * 1024          # conservative (v7x per-TC size)
    vmem_limit = min(max(vmem_cap // 2, 16 * 1024 * 1024), 64 * 1024 * 1024)
    # working set ~ 2 x (x tile + out tile) double buffered + tiny w/b
    tile_budget = max(vmem_limit // 6, 512 * 1024)

    # ---- lane handling when L is not 128-aligned ----------------------------
    L_work = L
    if L % 128 != 0 and pack * L * itemsize > tile_budget:
        # Pad lanes so we can tile them (rare shape; costs one extra HBM copy
        # but restores bounded, pipelined DMAs and unmasked stores).
        L_work = _round_up(L, 128)
        x2 = jnp.pad(x2, ((0, 0), (0, L_work - L)))

    # ---- tile selection (ragged grid; no divisor requirement) ---------------
    row_bytes = L_work * itemsize
    if L_work % 128 == 0:
        if pack * row_bytes <= tile_budget:
            tl = L_work
            tr = max(pack, (tile_budget // row_bytes) // pack * pack)
        else:
            tr = pack
            tl = max(128, (tile_budget // (pack * itemsize)) // 128 * 128)
            tl = min(tl, L_work)
    else:
        tl = L_work                           # full-lane block (legal: equals array dim)
        tr = max(pack, (tile_budget // max(row_bytes, 1)) // pack * pack)
    tr = min(tr, _round_up(R, pack))

    grid_r, grid_l = _cdiv(R, tr), _cdiv(L_work, tl)

    # ---- keep >=4 grid steps on large arrays so pipelining can overlap ------
    MIN_STEPS = 4
    if R * L_work * itemsize >= (2 << 20) and grid_r * grid_l < MIN_STEPS:
        want_r = _cdiv(MIN_STEPS, grid_l)
        tr_new = max(pack, _round_up(_cdiv(R, want_r), pack))
        if tr_new < tr:
            tr, grid_r = tr_new, _cdiv(R, tr_new)
        if grid_r * grid_l < MIN_STEPS and L_work % 128 == 0 and tl > 128:
            want_l = _cdiv(MIN_STEPS, grid_r)
            tl_new = max(128, _round_up(_cdiv(L_work, want_l), 128))
            if tl_new < tl:
                tl, grid_l = tl_new, _cdiv(L_work, tl_new)

    # ---- weight/bias: VMEM-resident when small, else per-row-block ----------
    Rp = grid_r * tr                          # rows covered by the (ragged) grid
    resident_wb = (Rp * 1024) <= max(vmem_limit // 16, 1 << 20)  # ~ (Rp,1) f32 VMEM footprint x2
    if resident_wb:
        if Rp > R:
            w_rows = jnp.pad(w_rows, ((0, Rp - R), (0, 0)))
            b_rows = jnp.pad(b_rows, ((0, Rp - R), (0, 0)))
        wb_spec = pl.BlockSpec((Rp, 1), lambda i, j: (0, 0))     # fetched once, resident
        kernel = _make_resident_kernel(tr)
    else:
        # Block index independent of lane axis -> fetched once per row step only.
        wb_spec = pl.BlockSpec((tr, 1), lambda i, j: (i, 0))
        kernel = _affine_relu_block_kernel

    x_spec = pl.BlockSpec((tr, tl), lambda i, j: (i, j))
    out_spec = pl.BlockSpec((tr, tl), lambda i, j: (i, j))

    out2 = pl.pallas_call(
        kernel,
        out_shape=jax.ShapeDtypeStruct((R, L_work), x.dtype),
        grid_spec=pl.GridSpec(
            grid=(grid_r, grid_l),
            in_specs=[x_spec, wb_spec, wb_spec],
            out_specs=out_spec,
        ),
        compiler_params=pltpu.CompilerParams(
            dimension_semantics=("parallel", "parallel"),
            vmem_limit_bytes=vmem_limit,
        ),
    )(x2, w_rows, b_rows)

    if L_work != L:
        out2 = out2[:, :L]
    return out2.reshape(N, C, H, W)


if __name__ == "__main__":
    # Small deterministic example consistent with the module's forward:
    # x: (batch=2, channels=4, 16, 16); weight/bias: (1, 4, 1, 1).
    N, C, H, W = 2, 4, 16, 16
    key = jax.random.PRNGKey(0)
    kx, kw, kb = jax.random.split(key, 3)

    x = jax.random.normal(kx, (N, C, H, W), dtype=jnp.float32)
    weight = jax.random.normal(kw, (1, C, 1, 1), dtype=jnp.float32)
    bias = jax.random.normal(kb, (1, C, 1, 1), dtype=jnp.float32)

    out = learnable_activation_relu(x, weight, bias)
    out = jax.block_until_ready(out)

    # Reference (same math as the PyTorch module: relu(x * weight + bias)).
    ref = jnp.maximum(x * weight + bias, 0.0)
    assert out.shape == (N, C, H, W)
    assert jnp.allclose(out, ref, atol=1e-6, rtol=1e-6)

    print("KERNEL_OK")
</pallas_src>

<mosaic_0001>
module attributes {stable_mosaic.version = 11 : i64} {
  func.func @kernel(%arg0: i32, %arg1: i32, %arg2: memref<8x256xf32, #tpu.memory_space<vmem>>, %arg3: memref<8x1xf32, #tpu.memory_space<vmem>>, %arg4: memref<8x1xf32, #tpu.memory_space<vmem>>, %arg5: memref<8x256xf32, #tpu.memory_space<vmem>>) attributes {dimension_semantics = [#tpu.dimension_semantics<parallel>, #tpu.dimension_semantics<parallel>], iteration_bounds = array<i64: 1, 1>, scalar_prefetch = 0 : i64, scratch_operands = 0 : i64, tpu.core_type = #tpu.core_type<tc>, window_params = [{transform_indices = @transform_0, window_bounds = array<i64: 8, 256>}, {pipeline_mode = #tpu.pipeline_mode<synchronous>, transform_indices = @transform_1, window_bounds = array<i64: 8, 1>}, {pipeline_mode = #tpu.pipeline_mode<synchronous>, transform_indices = @transform_2, window_bounds = array<i64: 8, 1>}, {transform_indices = @transform_3, window_bounds = array<i64: 8, 256>}]} {
    %c8_i32 = arith.constant 8 : i32
    %0 = arith.muli %arg0, %c8_i32 : i32
    %1 = tpu.assume_multiple %0, 8 : i32
    %2 = arith.index_cast %1 : i32 to index
    %c0 = arith.constant 0 : index
    %3 = vector.load %arg3[%2, %c0] : memref<8x1xf32, #tpu.memory_space<vmem>>, vector<8x1xf32>
    %4 = arith.index_cast %1 : i32 to index
    %c0_0 = arith.constant 0 : index
    %5 = vector.load %arg4[%4, %c0_0] : memref<8x1xf32, #tpu.memory_space<vmem>>, vector<8x1xf32>
    %c0_1 = arith.constant 0 : index
    %c0_2 = arith.constant 0 : index
    %6 = vector.load %arg2[%c0_1, %c0_2] : memref<8x256xf32, #tpu.memory_space<vmem>>, vector<8x256xf32>
    %7 = vector.broadcast %3 : vector<8x1xf32> to vector<8x256xf32>
    %8 = arith.mulf %6, %7 : vector<8x256xf32>
    %9 = vector.broadcast %5 : vector<8x1xf32> to vector<8x256xf32>
    %10 = arith.addf %8, %9 : vector<8x256xf32>
    %cst = arith.constant 0.000000e+00 : f32
    %11 = vector.broadcast %cst : f32 to vector<8x256xf32>
    %12 = arith.maximumf %10, %11 : vector<8x256xf32>
    %c0_3 = arith.constant 0 : index
    %c0_4 = arith.constant 0 : index
    %13 = vector.load %arg5[%c0_3, %c0_4] : memref<8x256xf32, #tpu.memory_space<vmem>>, vector<8x256xf32>
    tpu.vector_store %arg5[%c0_3, %c0_4], %12 {strides = array<i32>} : memref<8x256xf32, #tpu.memory_space<vmem>>, vector<8x256xf32>,
    return
  }
  func.func @transform_0(%arg0: i32, %arg1: i32) -> (i32, i32) {
    %c0_i32 = arith.constant 0 : i32
    return %arg0, %arg1 : i32, i32
  }
  func.func @transform_1(%arg0: i32, %arg1: i32) -> (i32, i32) {
    %c0_i32 = arith.constant 0 : i32
    %c0_i32_0 = arith.constant 0 : i32
    %c0_i32_1 = arith.constant 0 : i32
    return %c0_i32, %c0_i32_0 : i32, i32
  }
  func.func @transform_2(%arg0: i32, %arg1: i32) -> (i32, i32) {
    %c0_i32 = arith.constant 0 : i32
    %c0_i32_0 = arith.constant 0 : i32
    %c0_i32_1 = arith.constant 0 : i32
    return %c0_i32, %c0_i32_0 : i32, i32
  }
  func.func @transform_3(%arg0: i32, %arg1: i32) -> (i32, i32) {
    %c0_i32 = arith.constant 0 : i32
    return %arg0, %arg1 : i32, i32
  }
}

</mosaic_0001>

<bundles_post_ra>
// kernel: tpu_custom_call.1
= control target key start
LH: loop header
LB: loop body
LE: loop exit
PB: predicated region body
PF: predicated region fallthrough
CT: control target
= control target key end

     0   :  { %v81_v1 = vmov 0   ;;  %s127_s0 = inlined_call_operand.vmem [shape: f32[8,256], index: 0, kind: input, shape index: {}]   ;;  %s128_s1 = inlined_call_operand.vmem [shape: f32[8,1], index: 1, kind: input, shape index: {}]   ;;  %s129_s2 = inlined_call_operand.vmem [shape: f32[8,1], index: 2, kind: input, shape index: {}]   ;;  %s130_s3 = inlined_call_operand.hbm [shape: f32[8,256], index: 3, kind: output, shape index: {}]  }
   0x1   :  { %v17_v0 = vld [vmem:[%s128_s1] sm:$0xff]  ;;  %56 = vset.pattern.permute.xlu0 %v81_v1 }
   0x2   :  { %8 = vsyncpa [#allocation3], 0  ;;  %24 = vperm.xlu0 %56, %v17_v0   ;;  %v19_v2 = vld [vmem:[%s129_s2] sm:$0xff]  ;;  %v21_v4 = vld [vmem:[%s127_s0 + $0x8] sm:$0xff]  ;;  %s82_s1 = smov [#allocation2]  }
   0x3   :  { %v20_v3 = vld [vmem:[%s127_s0] sm:$0xff]  ;;  %s46_s20 = sshll.u32 %s82_s1, 4  ;;  %s47_s20 = int_to_ptr.vmem [resolvable:$true] %s46_s20 }
   0x4   :  { %s57_s2 = scalar_lea.vmem %s47_s20, 256  ;;  %p62_p1 = scmp.lt.s32.totalorder %s47_s20, %s47_s20 }
   0x5   :  { %p58_p0 = scmp.ne.s32.totalorder %s47_s20, %s57_s2  ;;  %p63_p2 = scmp.lt.s32.totalorder %s57_s2, %s57_s2 }
   0x6   :  { %31 = vperm.xlu0 %56, %v19_v2  }
   0x7   :  { %p64_p3 = por %p63_p2, %p62_p1 }
   0x9   :  { %p65_p4 = pnand %p64_p3, %p58_p0 }
  0x81   :  { %v25_v5 = vpop.permute.xlu0 %24 }
  0x82   :  { %v27_v6 = vmul.f32 %v25_v5, %v20_v3  ;;  %v28_v7 = vmul.f32 %v25_v5, %v21_v4 }
  0x85   :  { %v32_v8 = vpop.permute.xlu0 %31 }
  0x86   :  { %v34_v9 = vadd.f32 %v32_v8, %v27_v6  ;;  %v35_v10 = vadd.f32 %v32_v8, %v28_v7 }
  0x88   :  { %v36_v11 = vmax.f32 %v34_v9, 0.0  ;;  %v37_v12 = vmax.f32 %v35_v10, 0.0 }
  0x8a   :  { %38 = vst [vmem:[#allocation2] sm:$0xff] %v36_v11  ;;  %39 = vst [vmem:[#allocation2 + $0x8] sm:$0xff] %v37_v12 }
  0x8b   :  { %68 = shalt.err (!%p65_p4)
}
  0x8c   :  { %s69_s22 = scalar_lea.hbm %s130_s3, 256 }
  0x8d   :  { %p70_p5 = scmp.ne.s32.totalorder %s130_s3, %s69_s22  ;;  %p73_p6 = scmp.lt.u32.totalorder %s69_s22, %s130_s3 }
  0x8f   :  { %p75_p7 = pnand %p73_p6, %p70_p5 }
  0x91   :  { %78 = shalt.err (!%p75_p7)
}
  0x92   :  { %49 = dma.vmem_to_hbm [thread:$0]  %s47_s20, 256, %s130_s3, [#allocation3]  }
  0x93   :  { %79 = dma.done.wait [#allocation3], 256  }
  0x94   :  { %80 = vsyncadd [#allocation3], 4294967040 }
  0x95   :  { %53 = vsyncpa [#allocation3], 1 }

</bundles_post_ra>
